<compile_context>
chip_gen: v6e
topology: v6e:2x2x1
jax: 0.10.0
libtpu: 0.0.40
codegen_flags: <defaults>
</compile_context>

<pallas_src>
import functools
import math

import numpy as np
import jax
import jax.numpy as jnp
from jax.experimental import pallas as pl
from jax.experimental.pallas import tpu as pltpu

LEAKY_SLOPE = 0.01  # nn.LeakyReLU() default negative_slope


def _res_block_kernel(x_ref, wa_ref, ba_ref, wb_ref, bb_ref, out_ref, *, H, n1):
    # x_ref  : (B*H, W*Cin_pad)       f32   lane-dense input slab
    # wa_ref : (3*W*Cin_pad, 2*W*Co)  bf16  [conv1 | 1x1 skip] block-banded weights
    # ba_ref : (1, 2*W*Co)            f32   [b1 tiled over x | bs tiled over x]
    # wb_ref : (3*W*Co, W*Co)         bf16  conv2 block-banded weights
    # bb_ref : (1, W*Co)              f32   b2 tiled over x
    # out_ref: (B*H, W*Co)            f32   lane-dense output slab
    rows = x_ref.shape[0]
    x = x_ref[...]

    # In-kernel boundary predicates: y position within each image.
    row = jax.lax.broadcasted_iota(jnp.int32, (rows, 1), 0)
    if H & (H - 1) == 0:
        yy = jnp.bitwise_and(row, H - 1)
    else:
        yy = row % H
    has_prev = yy > 0            # row y-1 exists within the same image
    has_next = yy < (H - 1)      # row y+1 exists within the same image

    def neigh3(h, dtype):
        # Build the three ky blocks [y-1 | y | y+1] of the GEMM K dimension.
        # pltpu.roll wraps across image/batch edges; the predicates zero those
        # rows, reproducing the conv's zero padding in y.
        hp = jnp.where(has_prev, pltpu.roll(h, shift=1, axis=0),
                       jnp.zeros_like(h))
        hn = jnp.where(has_next, pltpu.roll(h, shift=rows - 1, axis=0),
                       jnp.zeros_like(h))
        return jnp.concatenate(
            [hp.astype(dtype), h.astype(dtype), hn.astype(dtype)], axis=1)

    # conv1 + 1x1 skip in a single MXU matmul (f32 accumulation).
    x3 = neigh3(x, wa_ref.dtype)                          # (rows, 3*W*Cin_pad)
    y1 = jnp.dot(x3, wa_ref[...], preferred_element_type=jnp.float32)
    y1 = y1 + ba_ref[...]
    pre1 = y1[:, :n1]          # conv1 pre-activation, lane = x*Cout + co
    skip = y1[:, n1:]          # 1x1 skip conv output (same lane layout)

    # LeakyReLU on the dense (rows, 128) slab (f32: safe on all generations).
    h1 = jnp.where(pre1 > 0, pre1, LEAKY_SLOPE * pre1)

    # conv2: same y-neighbourhood trick, single MXU matmul.
    h3 = neigh3(h1, wb_ref.dtype)                         # (rows, 3*W*Cout)
    y2 = jnp.dot(h3, wb_ref[...], preferred_element_type=jnp.float32)
    y2 = y2 + bb_ref[...]

    out_ref[...] = (y2 + skip).astype(out_ref.dtype)


def _band_select(W):
    """sel[src_x, dst_x, kx] = 1 iff src_x == dst_x + kx - 1 (zero-pad in x)."""
    s = np.zeros((W, W, 3), np.float32)
    for x in range(W):
        for k in range(3):
            src = x + k - 1
            if 0 <= src < W:
                s[src, x, k] = 1.0
    return jnp.asarray(s)


def _choose_cin_pad(c_in, W, lane=128):
    """Smallest c >= c_in with W*c a multiple of `lane` (if the padding is modest)."""
    step = lane // math.gcd(W, lane)
    c = ((c_in + step - 1) // step) * step
    return c if c <= max(2 * c_in, c_in + 8) else c_in


def pack_res_block_params(w1, b1, w2, b2, ws, bs, *, W, c_in_pad):
    """One-time repack of PyTorch-layout Conv2d params into block-banded GEMM
    weights.  NOT part of the per-call path."""
    C_out, C_in = w1.shape[0], w1.shape[1]
    n1 = W * C_out
    cdt = jnp.bfloat16

    # Zero-fill the padded input channels so the extra rows of wa are zero.
    pad_i = ((0, 0), (0, c_in_pad - C_in), (0, 0), (0, 0))
    w1p = jnp.pad(w1, pad_i)
    wsp = jnp.pad(ws, pad_i)

    sel = _band_select(W)                                   # (W, W, 3)
    w1_t = jnp.transpose(w1p, (2, 3, 1, 0))                 # (ky,kx,Ci,Co)
    w2_t = jnp.transpose(w2, (2, 3, 1, 0))                  # (ky,kx,Co,Co)
    ws_m = jnp.transpose(wsp[:, :, 0, 0], (1, 0))           # (Ci, Co)

    wa_conv = jnp.einsum('pxk,dkio->dpixo', sel, w1_t)      # (3,W,Ci,W,Co)
    wa_conv = wa_conv.reshape(3 * W * c_in_pad, n1)
    skip_blk = jnp.einsum('px,io->pixo', jnp.eye(W, dtype=w1.dtype), ws_m)
    wa_skip = jnp.stack([jnp.zeros_like(skip_blk), skip_blk,
                         jnp.zeros_like(skip_blk)], axis=0)
    wa_skip = wa_skip.reshape(3 * W * c_in_pad, n1)
    wa = jnp.concatenate([wa_conv, wa_skip], axis=1).astype(cdt)

    wb = jnp.einsum('pxk,dkio->dpixo', sel, w2_t)
    wb = wb.reshape(3 * W * C_out, n1).astype(cdt)

    ba = jnp.concatenate([jnp.tile(b1, W), jnp.tile(bs, W)])
    ba = ba.reshape(1, 2 * n1).astype(jnp.float32)
    bb = jnp.tile(b2, W).reshape(1, n1).astype(jnp.float32)
    return wa, ba, wb, bb


@jax.jit
def res_block_pallas(x_nchw, wa, ba, wb, bb):
    """x_nchw: (B, Cin, H, W); wa/ba/wb/bb from pack_res_block_params."""
    B, C_in, H, W = x_nchw.shape
    n1 = wb.shape[1]
    C_out = n1 // W
    c_in_pad = wa.shape[0] // (3 * W)

    # Only per-call glue: NCHW -> lane-packed (B*H, W*Cin_pad) slab.
    x_nhwc = jnp.transpose(x_nchw, (0, 2, 3, 1))            # (B,H,W,Cin)
    if c_in_pad != C_in:
        x_nhwc = jnp.pad(x_nhwc, ((0, 0), (0, 0), (0, 0), (0, c_in_pad - C_in)))
    x_slab = x_nhwc.reshape(B * H, W * c_in_pad).astype(jnp.float32)

    kernel = functools.partial(_res_block_kernel, H=H, n1=n1)
    vmem = lambda: pl.BlockSpec(memory_space=pltpu.MemorySpace.VMEM)
    out_slab = pl.pallas_call(
        kernel,
        out_shape=jax.ShapeDtypeStruct((B * H, n1), jnp.float32),
        in_specs=[vmem() for _ in range(5)],
        out_specs=vmem(),
    )(x_slab, wa, ba, wb, bb)

    out_nhwc = out_slab.reshape(B, H, W, C_out)
    return jnp.transpose(out_nhwc, (0, 3, 1, 2)).astype(x_nchw.dtype)


def _conv_ref_nchw(x_nchw, w_oihw, b, padding):
    """Pure-JAX reference conv (cross-correlation, like torch Conv2d)."""
    y = jax.lax.conv_general_dilated(
        x_nchw, w_oihw, window_strides=(1, 1),
        padding=[(padding, padding), (padding, padding)],
        dimension_numbers=("NCHW", "OIHW", "NCHW"))
    return y + b.reshape(1, -1, 1, 1)


def res_block_ref(x, w1, b1, w2, b2, ws, bs):
    h = _conv_ref_nchw(x, w1, b1, padding=1)
    h = jnp.where(h > 0, h, LEAKY_SLOPE * h)
    h = _conv_ref_nchw(h, w2, b2, padding=1)
    return h + _conv_ref_nchw(x, ws, bs, padding=0)


if __name__ == "__main__":
    B, C_in, C_out, H, W = 2, 4, 8, 16, 16

    key = jax.random.PRNGKey(0)
    kx, k1, kb1, k2, kb2, ks, kbs = jax.random.split(key, 7)

    x = jax.random.normal(kx, (B, C_in, H, W), jnp.float32)
    # Deterministic synthetic parameters (PyTorch Conv2d layouts).
    w1 = jax.random.normal(k1, (C_out, C_in, 3, 3), jnp.float32) * 0.1
    b1 = jax.random.normal(kb1, (C_out,), jnp.float32) * 0.1
    w2 = jax.random.normal(k2, (C_out, C_out, 3, 3), jnp.float32) * 0.1
    b2 = jax.random.normal(kb2, (C_out,), jnp.float32) * 0.1
    ws = jax.random.normal(ks, (C_out, C_in, 1, 1), jnp.float32) * 0.1
    bs = jax.random.normal(kbs, (C_out,), jnp.float32) * 0.1

    # One-time weight packing (init-time in a real model, not per forward call).
    c_in_pad = _choose_cin_pad(C_in, W)
    wa, ba, wb, bb = pack_res_block_params(w1, b1, w2, b2, ws, bs,
                                           W=W, c_in_pad=c_in_pad)
    wa, ba, wb, bb = jax.block_until_ready((wa, ba, wb, bb))

    out = jax.block_until_ready(res_block_pallas(x, wa, ba, wb, bb))
    ref = res_block_ref(x, w1, b1, w2, b2, ws, bs)

    assert out.shape == (B, C_out, H, W)
    # bf16 MXU operands (f32 accumulation) -> bf16-appropriate tolerance vs f32 ref.
    max_err = float(jnp.max(jnp.abs(out - ref)))
    assert jnp.allclose(out, ref, atol=5e-2, rtol=5e-2), max_err

    print("KERNEL_OK")
</pallas_src>

<mosaic_0001>
module attributes {stable_mosaic.version = 11 : i64} {
  func.func @_res_block_kernel(%arg0: memref<32x128xf32, #tpu.memory_space<vmem>>, %arg1: memref<384x256xbf16, #tpu.memory_space<vmem>>, %arg2: memref<1x256xf32, #tpu.memory_space<vmem>>, %arg3: memref<384x128xbf16, #tpu.memory_space<vmem>>, %arg4: memref<1x128xf32, #tpu.memory_space<vmem>>, %arg5: memref<32x128xf32, #tpu.memory_space<vmem>>) attributes {dimension_semantics = [], scalar_prefetch = 0 : i64, scratch_operands = 0 : i64, tpu.core_type = #tpu.core_type<tc>} {
    %c0 = arith.constant 0 : index
    %c0_0 = arith.constant 0 : index
    %0 = vector.load %arg0[%c0, %c0_0] : memref<32x128xf32, #tpu.memory_space<vmem>>, vector<32x128xf32>
    %1 = tpu.iota {dimensions = array<i32: 0>} : vector<32x1xi32>
    %c15_i32 = arith.constant 15 : i32
    %2 = vector.broadcast %c15_i32 : i32 to vector<32x1xi32>
    %3 = arith.andi %1, %2 : vector<32x1xi32>
    %c0_i32 = arith.constant 0 : i32
    %4 = vector.broadcast %c0_i32 : i32 to vector<32x1xi32>
    %5 = arith.cmpi sgt, %3, %4 : vector<32x1xi32>
    %c15_i32_1 = arith.constant 15 : i32
    %6 = vector.broadcast %c15_i32_1 : i32 to vector<32x1xi32>
    %7 = arith.cmpi slt, %3, %6 : vector<32x1xi32>
    %c1_i32 = arith.constant 1 : i32
    %8 = tpu.dynamic_rotate %0 by %c1_i32 dim 0 : vector<32x128xf32>, i32 -> vector<32x128xf32>
    %cst = arith.constant 0.000000e+00 : f32
    %9 = vector.broadcast %cst : f32 to vector<32x128xf32>
    %10 = vector.shape_cast %5 : vector<32x1xi1> to vector<32x1xi1>
    %11 = vector.broadcast %10 : vector<32x1xi1> to vector<32x128xi1>
    %12 = arith.select %11, %8, %9 : vector<32x128xi1>, vector<32x128xf32>
    %c31_i32 = arith.constant 31 : i32
    %13 = tpu.dynamic_rotate %0 by %c31_i32 dim 0 : vector<32x128xf32>, i32 -> vector<32x128xf32>
    %cst_2 = arith.constant 0.000000e+00 : f32
    %14 = vector.broadcast %cst_2 : f32 to vector<32x128xf32>
    %15 = vector.shape_cast %7 : vector<32x1xi1> to vector<32x1xi1>
    %16 = vector.broadcast %15 : vector<32x1xi1> to vector<32x128xi1>
    %17 = arith.select %16, %13, %14 : vector<32x128xi1>, vector<32x128xf32>
    %18 = arith.truncf %12 : vector<32x128xf32> to vector<32x128xbf16>
    %19 = arith.truncf %0 : vector<32x128xf32> to vector<32x128xbf16>
    %20 = arith.truncf %17 : vector<32x128xf32> to vector<32x128xbf16>
    %21 = tpu.concatenate %18, %19, %20 in 1 : vector<32x128xbf16>, vector<32x128xbf16>, vector<32x128xbf16> -> vector<32x384xbf16>
    %c0_3 = arith.constant 0 : index
    %c0_4 = arith.constant 0 : index
    %22 = vector.load %arg1[%c0_3, %c0_4] : memref<384x256xbf16, #tpu.memory_space<vmem>>, vector<384x256xbf16>
    %cst_5 = arith.constant dense<0.000000e+00> : vector<32x256xf32>
    %23 = tpu.matmul %21, %22, %cst_5 {dimension_numbers = #tpu.dot_dimension_numbers<[1], [0], [0], [1], [0, 0, 1, 1], [], []>} : vector<32x384xbf16>, vector<384x256xbf16>, vector<32x256xf32> -> vector<32x256xf32>
    %c0_6 = arith.constant 0 : index
    %c0_7 = arith.constant 0 : index
    %24 = vector.load %arg2[%c0_6, %c0_7] : memref<1x256xf32, #tpu.memory_space<vmem>>, vector<1x256xf32>
    %25 = vector.broadcast %24 : vector<1x256xf32> to vector<32x256xf32>
    %26 = arith.addf %23, %25 : vector<32x256xf32>
    %27 = vector.extract_strided_slice %26 {offsets = [0, 0], sizes = [32, 128], strides = [1, 1]} : vector<32x256xf32> to vector<32x128xf32>
    %28 = vector.extract_strided_slice %26 {offsets = [0, 128], sizes = [32, 128], strides = [1, 1]} : vector<32x256xf32> to vector<32x128xf32>
    %cst_8 = arith.constant 0.000000e+00 : f32
    %29 = vector.broadcast %cst_8 : f32 to vector<32x128xf32>
    %30 = arith.cmpf ogt, %27, %29 : vector<32x128xf32>
    %cst_9 = arith.constant 0.00999999977 : f32
    %31 = vector.broadcast %cst_9 : f32 to vector<32x128xf32>
    %32 = arith.mulf %31, %27 : vector<32x128xf32>
    %33 = arith.select %30, %27, %32 : vector<32x128xi1>, vector<32x128xf32>
    %c1_i32_10 = arith.constant 1 : i32
    %34 = tpu.dynamic_rotate %33 by %c1_i32_10 dim 0 : vector<32x128xf32>, i32 -> vector<32x128xf32>
    %cst_11 = arith.constant 0.000000e+00 : f32
    %35 = vector.broadcast %cst_11 : f32 to vector<32x128xf32>
    %36 = vector.shape_cast %5 : vector<32x1xi1> to vector<32x1xi1>
    %37 = vector.broadcast %36 : vector<32x1xi1> to vector<32x128xi1>
    %38 = arith.select %37, %34, %35 : vector<32x128xi1>, vector<32x128xf32>
    %c31_i32_12 = arith.constant 31 : i32
    %39 = tpu.dynamic_rotate %33 by %c31_i32_12 dim 0 : vector<32x128xf32>, i32 -> vector<32x128xf32>
    %cst_13 = arith.constant 0.000000e+00 : f32
    %40 = vector.broadcast %cst_13 : f32 to vector<32x128xf32>
    %41 = vector.shape_cast %7 : vector<32x1xi1> to vector<32x1xi1>
    %42 = vector.broadcast %41 : vector<32x1xi1> to vector<32x128xi1>
    %43 = arith.select %42, %39, %40 : vector<32x128xi1>, vector<32x128xf32>
    %44 = arith.truncf %38 : vector<32x128xf32> to vector<32x128xbf16>
    %45 = arith.truncf %33 : vector<32x128xf32> to vector<32x128xbf16>
    %46 = arith.truncf %43 : vector<32x128xf32> to vector<32x128xbf16>
    %47 = tpu.concatenate %44, %45, %46 in 1 : vector<32x128xbf16>, vector<32x128xbf16>, vector<32x128xbf16> -> vector<32x384xbf16>
    %c0_14 = arith.constant 0 : index
    %c0_15 = arith.constant 0 : index
    %48 = vector.load %arg3[%c0_14, %c0_15] : memref<384x128xbf16, #tpu.memory_space<vmem>>, vector<384x128xbf16>
    %cst_16 = arith.constant dense<0.000000e+00> : vector<32x128xf32>
    %49 = tpu.matmul %47, %48, %cst_16 {dimension_numbers = #tpu.dot_dimension_numbers<[1], [0], [0], [1], [0, 0, 1, 1], [], []>} : vector<32x384xbf16>, vector<384x128xbf16>, vector<32x128xf32> -> vector<32x128xf32>
    %c0_17 = arith.constant 0 : index
    %c0_18 = arith.constant 0 : index
    %50 = vector.load %arg4[%c0_17, %c0_18] : memref<1x128xf32, #tpu.memory_space<vmem>>, vector<1x128xf32>
    %51 = vector.broadcast %50 : vector<1x128xf32> to vector<32x128xf32>
    %52 = arith.addf %49, %51 : vector<32x128xf32>
    %53 = arith.addf %52, %28 : vector<32x128xf32>
    %c0_19 = arith.constant 0 : index
    %c0_20 = arith.constant 0 : index
    %54 = vector.load %arg5[%c0_19, %c0_20] : memref<32x128xf32, #tpu.memory_space<vmem>>, vector<32x128xf32>
    tpu.vector_store %arg5[%c0_19, %c0_20], %53 {strides = array<i32>} : memref<32x128xf32, #tpu.memory_space<vmem>>, vector<32x128xf32>,
    return
  }
}

</mosaic_0001>

<bundles_post_ra>
// kernel: res_block_pallas.1
= control target key start
LH: loop header
LB: loop body
LE: loop exit
PB: predicated region body
PF: predicated region fallthrough
CT: control target
= control target key end

     0   :  { %v1100_v1 = vmov 0   ;;  %v25_v17 = vlaneseq  ;;  %vm1101_vm2 = vmmov 1   ;;  %s1505_s1 = inlined_call_operand.vmem [shape: bf16[384,256], index: 1, kind: input, shape index: {}]   ;;  %s1506_s0 = inlined_call_operand.vmem [shape: f32[32,128], index: 0, kind: input, shape index: {}]   ;;  %s1507_s3 = inlined_call_operand.vmem [shape: bf16[384,128], index: 3, kind: input, shape index: {}]   ;;  %s1508_s2 = inlined_call_operand.vmem [shape: f32[1,256], index: 2, kind: input, shape index: {}]   ;;  %s1509_s4 = inlined_call_operand.vmem [shape: f32[1,128], index: 4, kind: input, shape index: {}]   ;;  %s1510_s5 = inlined_call_operand.vmem [shape: f32[32,128], index: 5, kind: output, shape index: {}]  }
   0x1   :  { %v1004_v0 = vld [vmem:[%s1505_s1 + $0x74] ss:$8 sps:$4 sm:$0xff]   ;;  %475 = vmatprep.mubr.bf16.mxu1 %v1100_v1  ;;  %v1006_v2 = vld [vmem:[%s1505_s1 + $0x70] ss:$8 sps:$4 sm:$0xff]   ;;  %v1007_v3 = vld [vmem:[%s1505_s1 + $0x64] ss:$8 sps:$4 sm:$0xff]  }
   0x2   :  { %390 = vmatprep.subr.bf16.mxu0 %v1004_v0  ;;  %v1009_v4 = vld [vmem:[%s1505_s1 + $0x60] ss:$8 sps:$4 sm:$0xff]   ;;  %v1010_v5 = vld [vmem:[%s1505_s1 + $0x54] ss:$8 sps:$4 sm:$0xff]   ;;  %v1012_v6 = vld [vmem:[%s1505_s1 + $0x50] ss:$8 sps:$4 sm:$0xff]  }
   0x3   :  { %391 = vmatpush1.bf16.msra.mxu0 %v1006_v2  ;;  %v1013_v7 = vld [vmem:[%s1505_s1 + $0x44] ss:$8 sps:$4 sm:$0xff]   ;;  %v1015_v8 = vld [vmem:[%s1505_s1 + $0x40] ss:$8 sps:$4 sm:$0xff]   ;;  %v1027_v9 = vld [vmem:[%s1505_s1 + $0x174] ss:$8 sps:$4 sm:$0xff]  }
   0x4   :  { %392 = vmatprep.subr.bf16.mxu0 %v1007_v3  ;;  %v1030_v10 = vld [vmem:[%s1505_s1 + $0x170] ss:$8 sps:$4 sm:$0xff]   ;;  %v1016_v11 = vld [vmem:[%s1505_s1 + $0x34] ss:$8 sps:$4 sm:$0xff]   ;;  %443 = vmatprep.subr.bf16.mxu1 %v1027_v9  ;;  %v1033_v12 = vld [vmem:[%s1505_s1 + $0x164] ss:$8 sps:$4 sm:$0xff]  }
   0x5   :  { %444 = vmatpush1.bf16.msra.mxu1 %v1030_v10  ;;  %v1036_v13 = vld [vmem:[%s1505_s1 + $0x160] ss:$8 sps:$4 sm:$0xff]   ;;  %v1018_v14 = vld [vmem:[%s1505_s1 + $0x30] ss:$8 sps:$4 sm:$0xff]   ;;  %v1019_v15 = vld [vmem:[%s1505_s1 + $0x24] ss:$8 sps:$4 sm:$0xff]  }
   0x6   :  { %445 = vmatprep.subr.bf16.mxu1 %v1033_v12  ;;  %v1039_v16 = vld [vmem:[%s1505_s1 + $0x154] ss:$8 sps:$4 sm:$0xff]   ;;  %v1042_v18 = vld [vmem:[%s1505_s1 + $0x150] ss:$8 sps:$4 sm:$0xff]   ;;  %v1021_v19 = vld [vmem:[%s1505_s1 + $0x20] ss:$8 sps:$4 sm:$0xff]  }
   0x7   :  { %393 = vmatpush1.bf16.msra.mxu0 %v1009_v4  ;;  %v1045_v20 = vld [vmem:[%s1505_s1 + $0x144] ss:$8 sps:$4 sm:$0xff]   ;;  %v1022_v21 = vld [vmem:[%s1505_s1 + $0x14] ss:$8 sps:$4 sm:$0xff]   ;;  %v1193_v22 = vshrl.u32 %v25_v17, 7 }
   0x8   :  { %394 = vmatprep.subr.bf16.mxu0 %v1010_v5  ;;  %v1024_v23 = vld [vmem:[%s1505_s1 + $0x10] ss:$8 sps:$4 sm:$0xff]   ;;  %v1048_v24 = vld [vmem:[%s1505_s1 + $0x140] ss:$8 sps:$4 sm:$0xff]   ;;  %v1051_v25 = vld [vmem:[%s1505_s1 + $0x134] ss:$8 sps:$4 sm:$0xff]  }
   0x9   :  { %446 = vmatpush1.bf16.msra.mxu1 %v1036_v13  ;;  %v1025_v26 = vld [vmem:[%s1505_s1 + $0x4] ss:$8 sps:$4 sm:$0xff]   ;;  %v27_v27 = vadd.s32 8, %v1193_v22  ;;  %v1054_v28 = vld [vmem:[%s1505_s1 + $0x130] ss:$8 sps:$4 sm:$0xff]   ;;  %v29_v33 = vadd.s32 24, %v1193_v22 }
   0xa   :  { %447 = vmatprep.subr.bf16.mxu1 %v1039_v16  ;;  %v1029_v29 = vld [vmem:[%s1505_s1] ss:$8 sps:$4 sm:$0xff]   ;;  %v1057_v30 = vld [vmem:[%s1505_s1 + $0x124] ss:$8 sps:$4 sm:$0xff]   ;;  %v1031_v31 = vld [vmem:[%s1505_s1 + $0xf4] ss:$8 sps:$4 sm:$0xff]  }
   0xb   :  { %395 = vmatpush1.bf16.msra.mxu0 %v1012_v6  ;;  %v31_v32 = vand.u32 15, %v27_v27  ;;  %v1035_v34 = vld [vmem:[%s1505_s1 + $0xf0] ss:$8 sps:$4 sm:$0xff]   ;;  %v1060_v35 = vld [vmem:[%s1505_s1 + $0x120] ss:$8 sps:$4 sm:$0xff]   ;;  %v33_v42 = vand.u32 15, %v29_v33 }
   0xc   :  { %396 = vmatprep.subr.bf16.mxu0 %v1013_v7  ;;  %v1063_v36 = vld [vmem:[%s1505_s1 + $0x114] ss:$8 sps:$4 sm:$0xff]   ;;  %v1233_v37 = vld [vmem:[%s1506_s0] sm:$0xff]  ;;  %v1241_v39 = vld [vmem:[%s1506_s0 + $0x8] sm:$0xff]  ;;  %vm67_vm1 = vcmp.lt.s32.totalorder %v1193_v22, 7  ;;  %vm46_vm6 = vcmp.lt.s32.totalorder %v1193_v22, 1 }
   0xd   :  { %448 = vmatpush1.bf16.msra.mxu1 %v1042_v18  ;;  %v1037_v38 = vld [vmem:[%s1505_s1 + $0xe4] ss:$8 sps:$4 sm:$0xff]   ;;  %v1246_v40 = vld [vmem:[%s1506_s0 + $0x10] sm:$0xff]  ;;  %vm1248_vm0 = vcmp.lt.s32.totalorder %v31_v32, 15  ;;  %v1041_v43 = vld [vmem:[%s1505_s1 + $0xe0] ss:$8 sps:$4 sm:$0xff]   ;;  %v86_v46 = vpack.c.bf16 %v1241_v39, %v1233_v37 }
   0xe   :  { %449 = vmatprep.subr.bf16.mxu1 %v1045_v20  ;;  %v1066_v44 = vld [vmem:[%s1505_s1 + $0x110] ss:$8 sps:$4 sm:$0xff]   ;;  %v1069_v45 = vld [vmem:[%s1505_s1 + $0x104] ss:$8 sps:$4 sm:$0xff]   ;;  %v1043_v47 = vld [vmem:[%s1505_s1 + $0xd4] ss:$8 sps:$4 sm:$0xff]  }
   0xf   :  { %397 = vmatpush1.bf16.msra.mxu0 %v1015_v8  ;;  %v63_v48 = vrot.slane %v1233_v37, 1  ;;  %v64_v49 = vrot.slane %v1241_v39, 1  ;;  %v65_v50 = vrot.slane %v1246_v40, 1  ;;  %vm1273_vm3 = vmpackc.low %vm1248_vm0, %vm1101_vm2  ;;  %v1072_v52 = vld [vmem:[%s1505_s1 + $0x100] ss:$8 sps:$4 sm:$0xff]   ;;  %422 = vmatprep.mubr.bf16.mxu0 %v86_v46  ;;  %v1283_v53 = vld [vmem:[%s1506_s0 + $0x18] sm:$0xff] }
  0x10   :  { %398 = vmatprep.subr.bf16.mxu0 %v1016_v11  ;;  %vm1285_vm4 = vcmp.lt.s32.totalorder %v33_v42, 15  ;;  %v1047_v55 = vld [vmem:[%s1505_s1 + $0xd0] ss:$8 sps:$4 sm:$0xff]   ;;  %v66_v56 = vrot.slane %v1283_v53, 1  ;;  %v1049_v58 = vld [vmem:[%s1505_s1 + $0xc4] ss:$8 sps:$4 sm:$0xff]  }
  0x11   :  { %450 = vmatpush1.bf16.msra.mxu1 %v1048_v24  ;;  %v1076_v57 = vld [vmem:[%s1507_s3 + $0x78] sm:$0xff]   ;;  %v69_v59 = vsel %vm67_vm1, %v64_v49, %v65_v50  ;;  %v70_v60 = vsel %vm67_vm1, %v63_v48, %v64_v49  ;;  %v1053_v62 = vld [vmem:[%s1505_s1 + $0xc0] ss:$8 sps:$4 sm:$0xff]   ;;  %vm1315_vm5 = vmpackc.low %vm1285_vm4, %vm1101_vm2  ;;  %v42_v10 = vrot.slane %v1233_v37, 7  ;;  %v43_v11 = vrot.slane %v1241_v39, 7 }
  0x12   :  { %451 = vmatprep.subr.bf16.mxu1 %v1051_v25  ;;  %v1078_v61 = vld [vmem:[%s1507_s3 + $0x38] sm:$0xff]   ;;  %v902_v63 = vpack.c.bf16 %v69_v59, %v70_v60  ;;  %v1061_v4 = vld [vmem:[%s1505_s1 + $0xa4] ss:$8 sps:$4 sm:$0xff]   ;;  %v68_v5 = vsel %vm67_vm1, %v65_v50, %v66_v56  ;;  %v71_v6 = vsel %vm67_vm1, %v66_v56, %v63_v48  ;;  %v1065_v8 = vld [vmem:[%s1505_s1 + $0xa0] ss:$8 sps:$4 sm:$0xff]   ;;  %v45_v12 = vrot.slane %v1283_v53, 7 }
  0x13   :  { %399 = vmatpush1.bf16.msra.mxu0 %v1018_v14  ;;  %v1055_v0 = vld [vmem:[%s1505_s1 + $0xb4] ss:$8 sps:$4 sm:$0xff]   ;;  %v1059_v3 = vld [vmem:[%s1505_s1 + $0xb0] ss:$8 sps:$4 sm:$0xff]   ;;  %v905_v7 = vpack.c.bf16 %v71_v6, %v68_v5  ;;  %v1073_v13 = vld [vmem:[%s1505_s1 + $0x84] ss:$8 sps:$4 sm:$0xff]   ;;  %v49_v16 = vsel %vm46_vm6, %v42_v10, %v43_v11 }
  0x14   :  { %400 = vmatprep.subr.bf16.mxu0 %v1019_v15  ;;  %v1071_v9 = vld [vmem:[%s1505_s1 + $0x90] ss:$8 sps:$4 sm:$0xff]   ;;  %v30_v14 = vand.u32 15, %v1193_v22  ;;  %v1075_v15 = vld [vmem:[%s1505_s1 + $0x80] ss:$8 sps:$4 sm:$0xff]   ;;  %v50_v17 = vsel %vm46_vm6, %v45_v12, %v42_v10  ;;  %v28_v18 = vadd.s32 16, %v1193_v22 }
  0x15   :  { %452 = vmatpush1.bf16.msra.mxu1 %v1054_v28  ;;  %v896_v20 = vpack.c.bf16 %v49_v16, %v50_v17  ;;  %v44_v24 = vrot.slane %v1246_v40, 7  ;;  %v1081_v32 = vld [vmem:[%s1507_s3 + $0x30] sm:$0xff]   ;;  %v1082_v33 = vld [vmem:[%s1507_s3 + $0x68] sm:$0xff]   ;;  %v1086_v37 = vld [vmem:[%s1507_s3 + $0xa0] sm:$0xff]   ;;  %v146_v56 = vsub.s32 1, %v1193_v22 }
  0x16   :  { %453 = vmatprep.subr.bf16.mxu1 %v1057_v30  ;;  %vm34_vm7 = vcmp.gt.s32.totalorder %v30_v14, 0  ;;  %v32_v25 = vand.u32 15, %v28_v18  ;;  %v1079_v30 = vld [vmem:[%s1507_s3 + $0x70] sm:$0xff]   ;;  %v1088_v39 = vld [vmem:[%s1507_s3 + $0x58] sm:$0xff]   ;;  %v1095_v46 = vld [vmem:[%s1507_s3 + $0x88] sm:$0xff]  }
  0x17   :  { %401 = vmatpush1.bf16.msra.mxu0 %v1021_v19  ;;  %v1077_v19 = vld [vmem:[%s1507_s3 + $0xb8] sm:$0xff]   ;;  %vm1363_vm8 = vmpackc.low %vm1101_vm2, %vm34_vm7  ;;  %v48_v27 = vsel %vm46_vm6, %v43_v11, %v44_v24  ;;  %v1091_v42 = vld [vmem:[%s1507_s3 + $0x50] sm:$0xff]  }
  0x18   :  { %402 = vmatprep.subr.bf16.mxu0 %v1022_v21  ;;  %vm36_vm9 = vcmp.gt.s32.totalorder %v32_v25, 0  ;;  %v1090_v41 = vld [vmem:[%s1507_s3 + $0x18] sm:$0xff]   ;;  %v1097_v48 = vld [vmem:[%s1507_s3 + $0x40] sm:$0xff]  }
  0x19   :  { %454 = vmatpush1.bf16.msra.mxu1 %v1060_v35  ;;  %vm1377_vm10 = vmpackc.low %vm1101_vm2, %vm36_vm9  ;;  %v1084_v35 = vld [vmem:[%s1507_s3 + $0x28] sm:$0xff]   ;;  %v1098_v49 = vld [vmem:[%s1507_s3 + $0x80] sm:$0xff]  }
  0x1a   :  { %455 = vmatprep.subr.bf16.mxu1 %v1063_v36  ;;  %v1085_v36 = vld [vmem:[%s1507_s3 + $0x60] sm:$0xff]  }
  0x1b   :  { %403 = vmatpush1.bf16.msra.mxu0 %v1024_v23  ;;  %v87_v23 = vpack.c.bf16 %v1283_v53, %v1246_v40  ;;  %v1089_v40 = vld [vmem:[%s1507_s3 + $0x98] sm:$0xff]   ;;  %v1099_v50 = vld [vmem:[%s1507_s3] sm:$0xff]   ;;  %v142_v53 = vsub.s32 0, %v1193_v22 }
  0x1c   :  { %404 = vmatprep.subr.bf16.mxu0 %v1025_v26  ;;  %v47_v26 = vsel %vm46_vm6, %v44_v24, %v45_v12  ;;  %v907_v2 = vld [vmem:[%s1509_s4] ss:$0 sm:$0xff] }
  0x1d   :  { %456 = vmatpush1.bf16.msra.mxu1 %v1066_v44  ;;  %v899_v28 = vpack.c.bf16 %v47_v26, %v48_v27  ;;  %v1093_v44 = vld [vmem:[%s1507_s3 + $0x10] sm:$0xff]  }
  0x1e   :  { %457 = vmatprep.subr.bf16.mxu1 %v1069_v45  ;;  %v1094_v45 = vld [vmem:[%s1507_s3 + $0x48] sm:$0xff]  }
  0x1f   :  { %405 = vmatpush1.bf16.msra.mxu0 %v1029_v29 }
  0x20   :  { %406 = vmatprep.subr.bf16.mxu0 %v1031_v31  ;;  %v1080_v31 = vld [vmem:[%s1507_s3 + $0xb0] sm:$0xff]  }
  0x21   :  { %458 = vmatpush1.bf16.msra.mxu1 %v1072_v52 }
  0x22   :  { %944 = vmatprep.subr.bf16.mxu1 %v1076_v57 }
  0x23   :  { %407 = vmatpush2.bf16.msra.mxu0 %v1035_v34  ;;  %v1083_v34 = vld [vmem:[%s1507_s3 + $0xa8] sm:$0xff]  }
  0x24   :  { %408 = vmatprep.subr.bf16.mxu0 %v1037_v38  ;;  %903 = vmatmul.mubr.msk.bf16.vlgmr.msra.gmra.mxu1 %vm1273_vm3, %v902_v63  ;;  %v1087_v38 = vld [vmem:[%s1507_s3 + $0x20] sm:$0xff]  }
  0x25   :  { %485 = vmatprep.mubr.bf16.mxu1 %v1100_v1  ;;  %945 = vmatpush3.bf16.msra.mxu1 %v1078_v61  ;;  %v1067_v1 = vld [vmem:[%s1505_s1 + $0x94] ss:$8 sps:$4 sm:$0xff]  }
  0x26   :  { %946 = vmatprep.subr.bf16.mxu1 %v1079_v30 }
  0x27   :  { %409 = vmatpush2.bf16.msra.mxu0 %v1041_v43  ;;  %v1092_v43 = vld [vmem:[%s1507_s3 + $0x90] sm:$0xff]  }
  0x28   :  { %410 = vmatprep.subr.bf16.mxu0 %v1043_v47  ;;  %v1096_v47 = vld [vmem:[%s1507_s3 + $0x8] sm:$0xff]  }
  0x29   :  { %947 = vmatpush3.bf16.msra.mxu1 %v1081_v32 }
  0x2a   :  { %948 = vmatprep.subr.bf16.mxu1 %v1082_v33 }
  0x2b   :  { %411 = vmatpush2.bf16.msra.mxu0 %v1047_v55  ;;  %v138_v55 = vld [vmem:[%s1508_s2] sm:$0x3] }
  0x2c   :  { %412 = vmatprep.subr.bf16.mxu0 %v1049_v58  ;;  %906 = vmatmul.mubr.msk.bf16.gmra.mxu1 %vm1315_vm5, %v905_v7  ;;  %v143_v57 = vrot.slane %v138_v55, %v142_v53  ;;  %v1451_v59 = vrot.slane %v138_v55, %v146_v56 }
  0x2d   :  { %949 = vmatpush3.bf16.msra.mxu1 %v1084_v35 }
  0x2e   :  { %950 = vmatprep.subr.bf16.mxu1 %v1085_v36 }
  0x2f   :  { %413 = vmatpush2.bf16.msra.mxu0 %v1053_v62 }
  0x30   :  { %414 = vmatprep.subr.bf16.mxu0 %v1055_v0 }
  0x31   :  { %951 = vmatpush3.bf16.msra.mxu1 %v1087_v38 }
  0x32   :  { %952 = vmatprep.subr.bf16.mxu1 %v1088_v39 }
  0x33   :  { %415 = vmatpush2.bf16.msra.mxu0 %v1059_v3 }
  0x34   :  { %416 = vmatprep.subr.bf16.mxu0 %v1061_v4 }
  0x35   :  { %953 = vmatpush3.bf16.msra.mxu1 %v1090_v41 }
  0x36   :  { %954 = vmatprep.subr.bf16.mxu1 %v1091_v42 }
  0x37   :  { %417 = vmatpush2.bf16.msra.mxu0 %v1065_v8 }
  0x38   :  { %418 = vmatprep.subr.bf16.mxu0 %v1067_v1 }
  0x39   :  { %955 = vmatpush3.bf16.msra.mxu1 %v1093_v44 }
  0x3a   :  { %956 = vmatprep.subr.bf16.mxu1 %v1094_v45 }
  0x3b   :  { %419 = vmatpush2.bf16.msra.mxu0 %v1071_v9 }
  0x3c   :  { %420 = vmatprep.subr.bf16.mxu0 %v1073_v13 }
  0x3d   :  { %957 = vmatpush3.bf16.msra.mxu1 %v1096_v47 }
  0x3e   :  { %958 = vmatprep.subr.bf16.mxu1 %v1097_v48 }
  0x3f   :  { %421 = vmatpush2.bf16.msra.mxu0 %v1075_v15 }
  0x40   :  { %982 = vmatprep.subr.bf16.mxu0 %v1077_v19 }
  0x41   :  { %959 = vmatpush3.bf16.msra.mxu1 %v1099_v50 }
  0x42   :  { %897 = vmatmul.mubr.msk.bf16.vlgmr.msra.gmra.mxu0 %vm1363_vm8, %v896_v20 }
  0x43   :  { %432 = vmatprep.mubr.bf16.mxu0 %v87_v23  ;;  %983 = vmatpush3.bf16.msra.mxu0 %v1077_v19 }
  0x44   :  { %984 = vmatprep.subr.bf16.mxu0 %v1080_v31 }
  0x47   :  { %985 = vmatpush3.bf16.msra.mxu0 %v1080_v31 }
  0x48   :  { %986 = vmatprep.subr.bf16.mxu0 %v1083_v34 }
  0x4a   :  { %900 = vmatmul.mubr.msk.bf16.gmra.mxu0 %vm1377_vm10, %v899_v28 }
  0x4b   :  { %987 = vmatpush3.bf16.msra.mxu0 %v1083_v34 }
  0x4c   :  { %988 = vmatprep.subr.bf16.mxu0 %v1086_v37 }
  0x4f   :  { %989 = vmatpush3.bf16.msra.mxu0 %v1086_v37 }
  0x50   :  { %990 = vmatprep.subr.bf16.mxu0 %v1089_v40 }
  0x53   :  { %991 = vmatpush3.bf16.msra.mxu0 %v1089_v40 }
  0x54   :  { %992 = vmatprep.subr.bf16.mxu0 %v1092_v43 }
  0x57   :  { %993 = vmatpush3.bf16.msra.mxu0 %v1092_v43 }
  0x58   :  { %994 = vmatprep.subr.bf16.mxu0 %v1095_v46 }
  0x5b   :  { %995 = vmatpush3.bf16.msra.mxu0 %v1095_v46 }
  0x5c   :  { %996 = vmatprep.subr.bf16.mxu0 %v1098_v49 }
  0x5f   :  { %997 = vmatpush3.bf16.msra.mxu0 %v1098_v49 }
  0xe4   :  { %v477_v52 = vpop.f32.mrf.mxu1 }
  0xe6   :  { %v479_v54 = vpop.f32.mrf.mxu1 }
  0xe8   :  { %v481_v58 = vpop.f32.mrf.mxu1 }
  0xea   :  { %v483_v63 = vpop.f32.mrf.mxu1 }
  0xec   :  { %v487_v7 = vpop.f32.mrf.mxu1 }
  0xee   :  { %v489_v15 = vpop.f32.mrf.mxu1 }
  0xf0   :  { %v491_v28 = vpop.f32.mrf.mxu1 }
  0xf2   :  { %v493_v55 = vpop.f32.mrf.mxu1 }
 0x102   :  { %v424_v60 = vpop.f32.mrf.mxu0 }
 0x103   :  { %v425_v61 = vadd.f32 %v424_v60, %v143_v57 }
 0x104   :  { %v426_v62 = vpop.f32.mrf.mxu0 }
 0x105   :  { %v478_v0 = vadd.f32 %v477_v52, %v425_v61  ;;  %v427_v3 = vadd.f32 %v426_v62, %v1451_v59 }
 0x106   :  { %v428_v4 = vpop.f32.mrf.mxu0 }
 0x107   :  { %v1454_v5 = vadd.f32 %v479_v54, %v427_v3  ;;  %v429_v6 = vadd.f32 %v428_v4, %v143_v57  ;;  %v500_v1 = vmul.f32 0.01, %v478_v0  ;;  %vm496_vm11 = vcmp.gt.f32.partialorder %v478_v0, 0.0 }
 0x108   :  { %v430_v8 = vpop.f32.mrf.mxu0 }
 0x109   :  { %v482_v9 = vadd.f32 %v481_v58, %v429_v6  ;;  %v431_v10 = vadd.f32 %v430_v8, %v1451_v59  ;;  %v504_v19 = vsel %vm496_vm11, %v478_v0, %v500_v1 }
 0x10a   :  { %v434_v11 = vpop.f32.mrf.mxu0  ;;  %v520_v34 = vrot.slane %v504_v19, 1  ;;  %v508_v43 = vrot.slane %v504_v19, 7 }
 0x10b   :  { %vm497_vm12 = vcmp.gt.f32.partialorder %v482_v9, 0.0  ;;  %v501_v12 = vmul.f32 0.01, %v482_v9  ;;  %v1457_v13 = vadd.f32 %v483_v63, %v431_v10  ;;  %v435_v14 = vadd.f32 %v434_v11, %v143_v57 }
 0x10c   :  { %v436_v16 = vpop.f32.mrf.mxu0 }
 0x10d   :  { %v488_v17 = vadd.f32 %v487_v7, %v435_v14  ;;  %v437_v18 = vadd.f32 %v436_v16, %v1451_v59  ;;  %v505_v20 = vsel %vm497_vm12, %v482_v9, %v501_v12 }
 0x10e   :  { %v438_v23 = vpop.f32.mrf.mxu0  ;;  %v534_v24 = vpack.c.bf16 %v505_v20, %v504_v19  ;;  %v521_v30 = vrot.slane %v505_v20, 1  ;;  %v509_v36 = vrot.slane %v505_v20, 7 }
 0x10f   :  { %vm498_vm13 = vcmp.gt.f32.partialorder %v488_v17, 0.0  ;;  %v502_v25 = vmul.f32 0.01, %v488_v17  ;;  %v1460_v26 = vadd.f32 %v489_v15, %v437_v18  ;;  %v439_v27 = vadd.f32 %v438_v23, %v143_v57 }
 0x110   :  { %769 = vmatprep.mubr.bf16.mxu1 %v534_v24  ;;  %v526_v38 = vsel %vm67_vm1, %v520_v34, %v521_v30  ;;  %v514_v45 = vsel %vm46_vm6, %v508_v43, %v509_v36  ;;  %v440_v56 = vpop.f32.mrf.mxu0 }
 0x111   :  { %v506_v31 = vsel %vm498_vm13, %v488_v17, %v502_v25  ;;  %v492_v32 = vadd.f32 %v491_v28, %v439_v27  ;;  %v441_v16 = vadd.f32 %v440_v56, %v1451_v59 }
 0x112   :  { %v522_v33 = vrot.slane %v506_v31, 1  ;;  %v510_v51 = vrot.slane %v506_v31, 7 }
 0x113   :  { %vm499_vm14 = vcmp.gt.f32.partialorder %v492_v32, 0.0  ;;  %v503_v35 = vmul.f32 0.01, %v492_v32  ;;  %v494_v20 = vadd.f32 %v493_v55, %v441_v16 }
 0x114   :  { %v525_v37 = vsel %vm67_vm1, %v521_v30, %v522_v33  ;;  %v513_v53 = vsel %vm46_vm6, %v509_v36, %v510_v51 }
 0x115   :  { %v507_v39 = vsel %vm499_vm14, %v492_v32, %v503_v35  ;;  %v939_v40 = vpack.c.bf16 %v525_v37, %v526_v38 }
 0x116   :  { %v511_v41 = vrot.slane %v507_v39, 7  ;;  %v523_v42 = vrot.slane %v507_v39, 1  ;;  %v535_v50 = vpack.c.bf16 %v507_v39, %v506_v31 }
 0x117   :  { %998 = vmatprep.mubr.msk.bf16.mxu0 %vm1273_vm3, %v939_v40 }
 0x118   :  { %v524_v44 = vsel %vm67_vm1, %v522_v33, %v523_v42  ;;  %v515_v46 = vsel %vm46_vm6, %v511_v41, %v508_v43  ;;  %v527_v47 = vsel %vm67_vm1, %v523_v42, %v520_v34  ;;  %v512_v52 = vsel %vm46_vm6, %v510_v51, %v511_v41 }
 0x119   :  { %v933_v48 = vpack.c.bf16 %v514_v45, %v515_v46  ;;  %v942_v49 = vpack.c.bf16 %v527_v47, %v524_v44  ;;  %v936_v54 = vpack.c.bf16 %v512_v52, %v513_v53 }
 0x11b   :  { %934 = vmatmul.mubr.msk.bf16.vlgmr.msra.gmra.mxu1 %vm1363_vm8, %v933_v48  ;;  %999 = vmatmul.mubr.msk.bf16.vlgmr.msra.gmra.mxu0 %vm1315_vm5, %v942_v49 }
 0x11c   :  { %777 = vmatprep.mubr.bf16.mxu1 %v535_v50 }
 0x123   :  { %937 = vmatmul.mubr.msk.bf16.gmra.mxu1 %vm1377_vm10, %v936_v54 }
 0x1db   :  { %v960_v57 = vpop.f32.mrf.mxu1  ;;  %v1000_v21 = vpop.f32.mrf.mxu0 }
 0x1dd   :  { %v961_v58 = vpop.f32.mrf.mxu1  ;;  %v820_v60 = vpop.f32.mrf.mxu0 }
 0x1de   :  { %v962_v61 = vadd.f32 %v961_v58, %v960_v57 }
 0x1df   :  { %v963_v62 = vpop.f32.mrf.mxu1  ;;  %v1001_v0 = vpop.f32.mrf.mxu0 }
 0x1e0   :  { %v772_v63 = vadd.f32 %v962_v61, %v907_v2 }
 0x1e1   :  { %v964_v22 = vpop.f32.mrf.mxu1  ;;  %v823_v8 = vpop.f32.mrf.mxu0 }
 0x1e2   :  { %v821_v3 = vadd.f32 %v820_v60, %v772_v63  ;;  %v965_v4 = vadd.f32 %v964_v22, %v963_v62 }
 0x1e3   :  { %v966_v6 = vpop.f32.mrf.mxu1 }
 0x1e4   :  { %v835_v29 = vadd.f32 %v821_v3, %v1454_v5  ;;  %v775_v7 = vadd.f32 %v965_v4, %v907_v2 }
 0x1e5   :  { %v967_v1 = vpop.f32.mrf.mxu1 }
 0x1e6   :  { %839 = vst [vmem:[%s1510_s5] sm:$0xff] %v835_v29  ;;  %v824_v9 = vadd.f32 %v823_v8, %v775_v7  ;;  %v968_v10 = vadd.f32 %v967_v1, %v966_v6 }
 0x1e7   :  { %v969_v11 = vpop.f32.mrf.mxu1 }
 0x1e8   :  { %v836_v12 = vadd.f32 %v824_v9, %v1457_v13  ;;  %v780_v14 = vadd.f32 %v968_v10, %v907_v2 }
 0x1e9   :  { %v970_v15 = vpop.f32.mrf.mxu1 }
 0x1ea   :  { %840 = vst [vmem:[%s1510_s5 + $0x8] sm:$0xff] %v836_v12  ;;  %v829_v5 = vadd.f32 %v1000_v21, %v780_v14  ;;  %v971_v17 = vadd.f32 %v970_v15, %v969_v11 }
 0x1ec   :  { %v837_v18 = vadd.f32 %v829_v5, %v1460_v26  ;;  %v783_v19 = vadd.f32 %v971_v17, %v907_v2 }
 0x1ee   :  { %841 = vst [vmem:[%s1510_s5 + $0x10] sm:$0xff] %v837_v18  ;;  %v832_v23 = vadd.f32 %v1001_v0, %v783_v19 }
 0x1f0   :  { %v838_v13 = vadd.f32 %v832_v23, %v494_v20 }
 0x1f2   :  { %842 = vst [vmem:[%s1510_s5 + $0x18] sm:$0xff] %v838_v13 }

</bundles_post_ra>
